<compile_context>
chip_gen: v5e
topology: v5e:2x2
jax: 0.10.0
libtpu: 0.0.40
codegen_flags: <defaults>
</compile_context>

<pallas_src>
import functools

import jax
import jax.numpy as jnp
from jax.experimental import pallas as pl
from jax.experimental.pallas import tpu as pltpu

EPS = 1e-5
_LANES = 128
_VMEM_BUDGET = 8 << 20           # target per-grid-step VMEM footprint
_VMEM_LIMIT = 48 * 1024 * 1024   # explicit scoped-VMEM limit (< v7x 64 MiB physical)


def _round_up(x, m):
    return (x + m - 1) // m * m


def _pick_images_per_step(n, per_image_bytes):
    nb = int(max(1, min(n, _VMEM_BUDGET // max(per_image_bytes, 1))))
    while n % nb:
        nb -= 1
    return nb


# ----------------------------- Pallas kernels -----------------------------

def _conv_stats_kernel(x_ref, w_ref, y_ref, stat_ref, *scratch,
                       K, pad, NB, H, W, Hout, Wout, Cin, Cout_p):
    """KxK stride-1 conv for NB images + fused per-step BN partial statistics.

    x_ref   : (NB, H*W, Cin)      when K == 1 and pad == 0
              (NB, H, W*Cin)      otherwise (lane-merged W,Cin)
    w_ref   : (K*K*Cin, Cout_p)   taps (kh, kw, ci)-major, Cout zero-padded to 128 lanes
    y_ref   : (NB*Hout*Wout, Cout_p)   conv output, lane-dense
    stat_ref: (1, 2, Cout_p)      row 0 = per-step channel mean, row 1 = centered M2
    scratch : [patch] (+ [xpad] when pad > 0); empty for 1x1 convs.
    """
    HW = Hout * Wout
    if K == 1 and pad == 0:
        # 1x1 conv: the input block already is the im2col patch (no scratch needed).
        patch = x_ref[...].reshape(NB * HW, Cin)
    else:
        patch_ref = scratch[0]
        if pad > 0:
            # Fold jnp.pad into the kernel: zero a VMEM halo buffer once per step
            # and copy the lane-merged image into its interior (no padded HBM copy).
            xp_ref = scratch[1]
            xp_ref[...] = jnp.zeros(xp_ref.shape, jnp.float32)
            xp_ref[:, pad:pad + H, pad * Cin:pad * Cin + W * Cin] = x_ref[...]
        else:
            xp_ref = x_ref
        KC = K * Cin
        # im2col from the lane-merged (Hp, Wp*Cin) layout: per (image, kh) we build
        # the whole K*Cin-wide column group in registers (kw shifts = lane-window
        # slices -> XLU rotations) and issue ONE wide store, instead of K*K
        # Cin-wide masked stores.
        for i in range(NB):
            for kh in range(K):
                slab = xp_ref[i, kh:kh + Hout, :]                  # (Hout, Wp*Cin)
                cols = [slab[:, kw * Cin:kw * Cin + Wout * Cin].reshape(HW, Cin)
                        for kw in range(K)]
                patch_ref[i * HW:(i + 1) * HW, kh * KC:(kh + 1) * KC] = (
                    jnp.concatenate(cols, axis=1))
        patch = patch_ref[...]

    # Single MXU matmul: contraction = K*K*Cin, M = NB*Hout*Wout rows,
    # N = Cout_p (full 128-lane output, matches the lane-dense store).
    # TODO(synk): cast patch/w to bf16 once shapes are compute-bound (re-validate tol).
    y = jnp.dot(patch, w_ref[...], preferred_element_type=jnp.float32)
    # NOTE: conv bias intentionally omitted -- training-mode BN cancels it exactly.

    mu = jnp.mean(y, axis=0, keepdims=True)                        # (1, Cout_p)
    d = y - mu
    m2 = jnp.sum(d * d, axis=0, keepdims=True)                     # (1, Cout_p)
    stat_ref[...] = jnp.concatenate([mu, m2], axis=0).reshape(1, 2, Cout_p)
    y_ref[...] = y


def _bn_relu_nchw_kernel(y_ref, s_ref, t_ref, o_ref, *, NB, HW, Cout):
    """out = relu(y * scale + shift), emitted directly in NCHW layout.

    y_ref        : (NB*HW, Cout_p)   lane-dense activation tile
    s_ref, t_ref : (1, Cout_p)
    o_ref        : (NB, Cout, HW)    NHWC->NCHW transpose folded in here (XLU)
    """
    z = jnp.maximum(y_ref[...] * s_ref[...] + t_ref[...], 0.0)     # (NB*HW, Cout_p)
    for i in range(NB):
        zt = z[i * HW:(i + 1) * HW, :].T                           # (Cout_p, HW)
        o_ref[i] = zt[:Cout, :]                                    # drop pad channels


# ----------------------------- wrapper -----------------------------

def convolution_block(x_nchw, params, *, kernel_size, padding=0):
    """Conv2d(kernel_size, padding, stride=1) -> BatchNorm2d(train) -> ReLU.

    x_nchw : (N, Cin, H, W) float32, NCHW like PyTorch.
    params : dict with "w" (K,K,Cin,Cout), "b" (Cout,), "gamma", "beta".
    Returns (N, Cout, Hout, Wout) in NCHW.
    """
    K, pad = int(kernel_size), int(padding)
    w, gamma, beta = params["w"], params["gamma"], params["beta"]

    x = jnp.transpose(x_nchw, (0, 2, 3, 1)).astype(jnp.float32)    # NCHW -> NHWC
    N, H, W, Cin = x.shape
    Cout = w.shape[-1]
    Hp, Wp = H + 2 * pad, W + 2 * pad
    Hout, Wout = Hp - K + 1, Wp - K + 1
    HW = Hout * Wout
    KKC = K * K * Cin
    Cout_p = _round_up(Cout, _LANES)       # full 128-lane MXU output / lane-dense stores

    # Weights / BN affine zero-padded to Cout_p lanes (pad channels stay exactly 0).
    w2 = jnp.pad(w.reshape(KKC, Cout).astype(jnp.float32), ((0, 0), (0, Cout_p - Cout)))
    gamma_p = jnp.pad(gamma.astype(jnp.float32), (0, Cout_p - Cout))
    beta_p = jnp.pad(beta.astype(jnp.float32), (0, Cout_p - Cout))

    one_by_one = (K == 1 and pad == 0)

    # Images per grid step: biggest batch block that keeps the step under the VMEM budget.
    per_img = 4 * ((0 if one_by_one else HW * KKC)      # patch scratch
                   + (Hp * Wp * Cin if pad > 0 else 0)  # in-kernel pad buffer
                   + 2 * H * W * Cin                    # double-buffered input block
                   + 2 * HW * Cout_p)                   # double-buffered y block
    NB = _pick_images_per_step(N, per_img)
    G = N // NB
    # TODO(synk): for very large feature maps (v7x, 64 MiB VMEM) also tile over Hout rows.

    cp = pltpu.CompilerParams(dimension_semantics=("parallel",),
                              vmem_limit_bytes=_VMEM_LIMIT)

    if one_by_one:
        x_in = x.reshape(N, H * W, Cin)                 # free reshape
        x_spec = pl.BlockSpec((NB, H * W, Cin), lambda g: (g, 0, 0))
        scratch = []
    else:
        x_in = x.reshape(N, H, W * Cin)                 # lane-merged, free reshape
        x_spec = pl.BlockSpec((NB, H, W * Cin), lambda g: (g, 0, 0))
        scratch = [pltpu.VMEM((NB * HW, KKC), jnp.float32)]
        if pad > 0:
            scratch.append(pltpu.VMEM((NB, Hp, Wp * Cin), jnp.float32))

    conv_kernel = functools.partial(
        _conv_stats_kernel, K=K, pad=pad, NB=NB, H=H, W=W,
        Hout=Hout, Wout=Wout, Cin=Cin, Cout_p=Cout_p)

    # ---- pass 1: conv + fused per-step BN partial statistics -------------
    # TODO(synk): the invariant weight block is still double-buffered by the default
    # pipeline; pl.Buffered(1) on its BlockSpec would save VMEM for large weights.
    y2, stats = pl.pallas_call(
        conv_kernel,
        out_shape=(jax.ShapeDtypeStruct((N * HW, Cout_p), jnp.float32),
                   jax.ShapeDtypeStruct((G, 2, Cout_p), jnp.float32)),
        grid=(G,),
        in_specs=[x_spec,
                  pl.BlockSpec((KKC, Cout_p), lambda g: (0, 0))],
        out_specs=(pl.BlockSpec((NB * HW, Cout_p), lambda g: (g, 0)),
                   pl.BlockSpec((1, 2, Cout_p), lambda g: (g, 0, 0))),
        scratch_shapes=scratch,
        compiler_params=cp,
    )(x_in, w2)

    # ---- tiny scalar algebra: combine per-step partials (Chan et al., f32) ----
    means = stats[:, 0, :]                              # (G, Cout_p)
    m2s = stats[:, 1, :]                                # (G, Cout_p)
    cnt_per = float(NB * HW)
    total = float(N * HW)
    mean = jnp.mean(means, axis=0)                      # equal counts per step
    m2 = jnp.sum(m2s, axis=0) + cnt_per * jnp.sum((means - mean[None, :]) ** 2, axis=0)
    var = m2 / total                                    # biased variance (torch BN forward)
    scale = gamma_p * jax.lax.rsqrt(var + EPS)
    shift = beta_p - mean * scale

    # ---- pass 2: BN affine + ReLU on big lane-dense tiles, NCHW emitted in-kernel ----
    out3 = pl.pallas_call(
        functools.partial(_bn_relu_nchw_kernel, NB=NB, HW=HW, Cout=Cout),
        out_shape=jax.ShapeDtypeStruct((N, Cout, HW), jnp.float32),
        grid=(G,),
        in_specs=[pl.BlockSpec((NB * HW, Cout_p), lambda g: (g, 0)),
                  pl.BlockSpec((1, Cout_p), lambda g: (0, 0)),
                  pl.BlockSpec((1, Cout_p), lambda g: (0, 0))],
        out_specs=pl.BlockSpec((NB, Cout, HW), lambda g: (g, 0, 0)),
        compiler_params=cp,
    )(y2, scale.reshape(1, Cout_p), shift.reshape(1, Cout_p))

    return out3.reshape(N, Cout, Hout, Wout)            # free trailing-dim split


# ----------------------------- parameters -----------------------------

def init_conv_block(key, cin, cout, K):
    kw, kb = jax.random.split(key)
    fan_in = cin * K * K
    bound = 1.0 / (fan_in ** 0.5)                       # torch Conv2d default init range
    return {
        "w": jax.random.uniform(kw, (K, K, cin, cout), jnp.float32, -bound, bound),
        "b": jax.random.uniform(kb, (cout,), jnp.float32, -bound, bound),
        "gamma": jnp.ones((cout,), jnp.float32),        # BatchNorm2d defaults
        "beta": jnp.zeros((cout,), jnp.float32),
    }


# ----------------------------- pure-JAX reference -----------------------------

def _conv_block_ref(x_nhwc, p, K, pad):
    y = jax.lax.conv_general_dilated(
        x_nhwc, p["w"], window_strides=(1, 1),
        padding=((pad, pad), (pad, pad)),
        dimension_numbers=("NHWC", "HWIO", "NHWC"),
    ) + p["b"].reshape(1, 1, 1, -1)                     # reference keeps the conv bias
    mean = jnp.mean(y, axis=(0, 1, 2), keepdims=True)
    var = jnp.var(y, axis=(0, 1, 2), keepdims=True)
    yn = (y - mean) * jax.lax.rsqrt(var + EPS)
    return jnp.maximum(yn * p["gamma"].reshape(1, 1, 1, -1)
                       + p["beta"].reshape(1, 1, 1, -1), 0.0)


# ----------------------------- main -----------------------------

if __name__ == "__main__":
    key = jax.random.PRNGKey(0)
    kx, k1, k2, k3 = jax.random.split(key, 4)

    N, Cin, H, W, Cout = 2, 4, 16, 16, 8
    x = jax.random.normal(kx, (N, Cin, H, W), jnp.float32)   # NCHW like PyTorch
    x_nhwc = jnp.transpose(x, (0, 2, 3, 1))

    # Exercise the same ConvolutionBlock configs Inception uses: 1x1, 3x3(p=1), 5x5(p=2).
    for (K, pad, kk) in [(1, 0, k1), (3, 1, k2), (5, 2, k3)]:
        params = init_conv_block(kk, Cin, Cout, K)
        out = jax.block_until_ready(
            convolution_block(x, params, kernel_size=K, padding=pad))
        ref = jax.block_until_ready(
            jnp.transpose(_conv_block_ref(x_nhwc, params, K, pad), (0, 3, 1, 2)))
        assert out.shape == (N, Cout, H, W), (K, out.shape)
        err = float(jnp.max(jnp.abs(out - ref)))
        assert jnp.allclose(out, ref, atol=2e-3, rtol=2e-3), (K, err)

    print("KERNEL_OK")
</pallas_src>

<mosaic_0001>
module attributes {stable_mosaic.version = 11 : i64} {
  func.func @_conv_stats_kernel(%arg0: i32, %arg1: memref<2x256x4xf32, #tpu.memory_space<vmem>>, %arg2: memref<4x128xf32, #tpu.memory_space<vmem>>, %arg3: memref<512x128xf32, #tpu.memory_space<vmem>>, %arg4: memref<1x2x128xf32, #tpu.memory_space<vmem>>) attributes {dimension_semantics = [#tpu.dimension_semantics<parallel>], iteration_bounds = array<i64: 1>, scalar_prefetch = 0 : i64, scratch_operands = 0 : i64, tpu.core_type = #tpu.core_type<tc>, window_params = [{transform_indices = @transform_0, window_bounds = array<i64: 2, 256, 4>}, {pipeline_mode = #tpu.pipeline_mode<synchronous>, transform_indices = @transform_1, window_bounds = array<i64: 4, 128>}, {transform_indices = @transform_2, window_bounds = array<i64: 512, 128>}, {transform_indices = @transform_3, window_bounds = array<i64: 1, 2, 128>}]} {
    %c0 = arith.constant 0 : index
    %c0_0 = arith.constant 0 : index
    %c0_1 = arith.constant 0 : index
    %0 = vector.load %arg1[%c0, %c0_0, %c0_1] : memref<2x256x4xf32, #tpu.memory_space<vmem>>, vector<2x256x4xf32>
    %1 = vector.shape_cast %0 : vector<2x256x4xf32> to vector<512x4xf32>
    %c0_2 = arith.constant 0 : index
    %c0_3 = arith.constant 0 : index
    %2 = vector.load %arg2[%c0_2, %c0_3] : memref<4x128xf32, #tpu.memory_space<vmem>>, vector<4x128xf32>
    %cst = arith.constant dense<0.000000e+00> : vector<512x128xf32>
    %3 = tpu.matmul %1, %2, %cst {dimension_numbers = #tpu.dot_dimension_numbers<[1], [0], [0], [1], [0, 0, 1, 1], [], []>} : vector<512x4xf32>, vector<4x128xf32>, vector<512x128xf32> -> vector<512x128xf32>
    %cst_4 = arith.constant dense<0.000000e+00> : vector<128xf32>
    %4 = vector.multi_reduction <add>, %3, %cst_4 [0] : vector<512x128xf32> to vector<128xf32>
    %5 = vector.shape_cast %4 : vector<128xf32> to vector<1x128xf32>
    %cst_5 = arith.constant 5.120000e+02 : f32
    %6 = vector.broadcast %cst_5 : f32 to vector<1x128xf32>
    %7 = arith.divf %5, %6 : vector<1x128xf32>
    %8 = vector.broadcast %7 : vector<1x128xf32> to vector<512x128xf32>
    %9 = arith.subf %3, %8 : vector<512x128xf32>
    %10 = arith.mulf %9, %9 : vector<512x128xf32>
    %cst_6 = arith.constant dense<0.000000e+00> : vector<128xf32>
    %11 = vector.multi_reduction <add>, %10, %cst_6 [0] : vector<512x128xf32> to vector<128xf32>
    %12 = vector.shape_cast %11 : vector<128xf32> to vector<1x128xf32>
    %13 = tpu.concatenate %7, %12 in 0 : vector<1x128xf32>, vector<1x128xf32> -> vector<2x128xf32>
    %14 = vector.shape_cast %13 : vector<2x128xf32> to vector<1x2x128xf32>
    %c0_7 = arith.constant 0 : index
    %c0_8 = arith.constant 0 : index
    %c0_9 = arith.constant 0 : index
    %15 = vector.load %arg4[%c0_7, %c0_8, %c0_9] : memref<1x2x128xf32, #tpu.memory_space<vmem>>, vector<1x2x128xf32>
    tpu.vector_store %arg4[%c0_7, %c0_8, %c0_9], %14 {strides = array<i32>} : memref<1x2x128xf32, #tpu.memory_space<vmem>>, vector<1x2x128xf32>,
    %c0_10 = arith.constant 0 : index
    %c0_11 = arith.constant 0 : index
    %16 = vector.load %arg3[%c0_10, %c0_11] : memref<512x128xf32, #tpu.memory_space<vmem>>, vector<512x128xf32>
    tpu.vector_store %arg3[%c0_10, %c0_11], %3 {strides = array<i32>} : memref<512x128xf32, #tpu.memory_space<vmem>>, vector<512x128xf32>,
    return
  }
  func.func @transform_0(%arg0: i32) -> (i32, i32, i32) {
    %c0_i32 = arith.constant 0 : i32
    %c0_i32_0 = arith.constant 0 : i32
    %c0_i32_1 = arith.constant 0 : i32
    return %arg0, %c0_i32, %c0_i32_0 : i32, i32, i32
  }
  func.func @transform_1(%arg0: i32) -> (i32, i32) {
    %c0_i32 = arith.constant 0 : i32
    %c0_i32_0 = arith.constant 0 : i32
    %c0_i32_1 = arith.constant 0 : i32
    return %c0_i32, %c0_i32_0 : i32, i32
  }
  func.func @transform_2(%arg0: i32) -> (i32, i32) {
    %c0_i32 = arith.constant 0 : i32
    %c0_i32_0 = arith.constant 0 : i32
    return %arg0, %c0_i32 : i32, i32
  }
  func.func @transform_3(%arg0: i32) -> (i32, i32, i32) {
    %c0_i32 = arith.constant 0 : i32
    %c0_i32_0 = arith.constant 0 : i32
    %c0_i32_1 = arith.constant 0 : i32
    return %arg0, %c0_i32, %c0_i32_0 : i32, i32, i32
  }
}

</mosaic_0001>

<bundles_post_ra>
// kernel: tpu_custom_call.1
= control target key start
LH: loop header
LB: loop body
LE: loop exit
PB: predicated region body
PF: predicated region fallthrough
CT: control target
= control target key end

     0   :  { %9 = vsyncpa [#allocation3], 0  ;;  %vm273_vm0 = vcmask 1043456   ;;  %vm80_vm1 = vcmask 31744   ;;  %s1665_s0 = inlined_call_operand.vmem [shape: f32[2,256,4], index: 0, kind: input, shape index: {}]   ;;  %s1666_s1 = inlined_call_operand.vmem [shape: f32[4,128], index: 1, kind: input, shape index: {}]   ;;  %s1667_s2 = inlined_call_operand.hbm [shape: f32[512,128], index: 2, kind: output, shape index: {0}]   ;;  %s1668_s3 = inlined_call_operand.hbm [shape: f32[1,2,128], index: 3, kind: output, shape index: {1}]  }
   0x1   :  { %v79_v0 = vld [vmem:[%s1666_s1] sm:$0xf] }
   0x2   :  { %v15_v1 = vld [vmem:[%s1665_s0] sm:$0xff]  ;;  %861 = vmatpush.msk.msra.mxu0 %vm273_vm0, %v79_v0  ;;  %926 = vmatpush.msk.msra.mxu1 %vm273_vm0, %v79_v0 }
   0x3   :  { %862 = vmatmul.msk.f32.vlgmr.msra.gmra.mxu0 %vm80_vm1, %v15_v1  ;;  %v31_v2 = vld [vmem:[%s1665_s0 + $0x80] sm:$0xff]  ;;  %927 = vmatpush.msk.msra.mxu2 %vm273_vm0, %v79_v0 }
   0x4   :  { %10 = vsyncpa [#allocation5], 0  ;;  %878 = vmatmul.msk.f32.vlgmr.msra.gmra.mxu1 %vm80_vm1, %v31_v2  ;;  %928 = vmatpush.msk.msra.mxu3 %vm273_vm0, %v79_v0  ;;  %v16_v3 = vld [vmem:[%s1665_s0 + $0x8] sm:$0xff]  ;;  %v17_v5 = vld [vmem:[%s1665_s0 + $0x10] sm:$0xff]  ;;  %s833_s30 = sshll.u32 %s1667_s2, 4  ;;  %s989_s4 = smov [#allocation2]   ;;  %s834_s30 = int_to_ptr.hbm [resolvable:$true] %s833_s30 }
   0x5   :  { %v32_v4 = vld [vmem:[%s1665_s0 + $0x88] sm:$0xff]  ;;  %v33_v6 = vld [vmem:[%s1665_s0 + $0x90] sm:$0xff]  ;;  %v18_v7 = vld [vmem:[%s1665_s0 + $0x18] sm:$0xff]  ;;  %s831_s5 = sshll.u32 %s989_s4, 4  ;;  %s990_s6 = smov 128   ;;  %vm760_vm3 = vcmask 1040384   ;;  %s832_s5 = int_to_ptr.vmem [resolvable:$true] %s831_s5 }
   0x6   :  { %v34_v8 = vld [vmem:[%s1665_s0 + $0x98] sm:$0xff]  ;;  %v47_v9 = vld [vmem:[%s1665_s0 + $0x100] sm:$0xff]  ;;  %v48_v12 = vld [vmem:[%s1665_s0 + $0x108] sm:$0xff]  ;;  %s991_s7 = smov 8   ;;  %s992_s2 = smov [#allocation4]  }
   0x7   :  { %894 = vmatmul.msk.f32.vlgmr.msra.gmra.mxu2 %vm80_vm1, %v47_v9  ;;  %v19_v10 = vld [vmem:[%s1665_s0 + $0x20] sm:$0xff]  ;;  %v20_v13 = vld [vmem:[%s1665_s0 + $0x28] sm:$0xff]  ;;  %v49_v15 = vld [vmem:[%s1665_s0 + $0x110] sm:$0xff]  ;;  %s845_s8 = sshll.u32 %s992_s2, 4  ;;  %s847_s11 = sshll.u32 %s1668_s3, 4  ;;  %s846_s8 = int_to_ptr.vmem [resolvable:$true] %s845_s8  ;;  %s848_s11 = int_to_ptr.hbm [resolvable:$true] %s847_s11 }
   0x8   :  { %v35_v11 = vld [vmem:[%s1665_s0 + $0xa0] sm:$0xff]  ;;  %v36_v14 = vld [vmem:[%s1665_s0 + $0xa8] sm:$0xff]  ;;  %v21_v16 = vld [vmem:[%s1665_s0 + $0x30] sm:$0xff] }
   0x9   :  { %v37_v17 = vld [vmem:[%s1665_s0 + $0xb0] sm:$0xff]  ;;  %v50_v18 = vld [vmem:[%s1665_s0 + $0x118] sm:$0xff]  ;;  %v51_v21 = vld [vmem:[%s1665_s0 + $0x120] sm:$0xff] }
   0xa   :  { %v22_v19 = vld [vmem:[%s1665_s0 + $0x38] sm:$0xff]  ;;  %v63_v22 = vld [vmem:[%s1665_s0 + $0x180] sm:$0xff]  ;;  %v52_v25 = vld [vmem:[%s1665_s0 + $0x128] sm:$0xff] }
   0xb   :  { %863 = vmatmul.msk.f32.gmra.mxu0 %vm80_vm1, %v16_v3  ;;  %v38_v20 = vld [vmem:[%s1665_s0 + $0xb8] sm:$0xff]  ;;  %910 = vmatmul.msk.f32.vlgmr.msra.gmra.mxu3 %vm80_vm1, %v63_v22  ;;  %v23_v23 = vld [vmem:[%s1665_s0 + $0x40] sm:$0xff]  ;;  %v64_v26 = vld [vmem:[%s1665_s0 + $0x188] sm:$0xff] }
   0xc   :  { %879 = vmatmul.msk.f32.gmra.mxu1 %vm80_vm1, %v32_v4  ;;  %v39_v24 = vld [vmem:[%s1665_s0 + $0xc0] sm:$0xff]  ;;  %v24_v27 = vld [vmem:[%s1665_s0 + $0x48] sm:$0xff]  ;;  %v53_v29 = vld [vmem:[%s1665_s0 + $0x130] sm:$0xff] }
   0xd   :  { %v40_v28 = vld [vmem:[%s1665_s0 + $0xc8] sm:$0xff]  ;;  %v65_v30 = vld [vmem:[%s1665_s0 + $0x190] sm:$0xff]  ;;  %v54_v33 = vld [vmem:[%s1665_s0 + $0x138] sm:$0xff] }
   0xe   :  { %v25_v31 = vld [vmem:[%s1665_s0 + $0x50] sm:$0xff]  ;;  %v66_v34 = vld [vmem:[%s1665_s0 + $0x198] sm:$0xff]  ;;  %v55_v37 = vld [vmem:[%s1665_s0 + $0x140] sm:$0xff] }
   0xf   :  { %895 = vmatmul.msk.f32.gmra.mxu2 %vm80_vm1, %v48_v12  ;;  %v41_v32 = vld [vmem:[%s1665_s0 + $0xd0] sm:$0xff]  ;;  %v26_v35 = vld [vmem:[%s1665_s0 + $0x58] sm:$0xff]  ;;  %v67_v38 = vld [vmem:[%s1665_s0 + $0x1a0] sm:$0xff] }
  0x10   :  { %v42_v36 = vld [vmem:[%s1665_s0 + $0xd8] sm:$0xff]  ;;  %v27_v39 = vld [vmem:[%s1665_s0 + $0x60] sm:$0xff]  ;;  %v56_v41 = vld [vmem:[%s1665_s0 + $0x148] sm:$0xff] }
  0x11   :  { %v43_v40 = vld [vmem:[%s1665_s0 + $0xe0] sm:$0xff]  ;;  %v68_v42 = vld [vmem:[%s1665_s0 + $0x1a8] sm:$0xff]  ;;  %v57_v45 = vld [vmem:[%s1665_s0 + $0x150] sm:$0xff] }
  0x12   :  { %v28_v43 = vld [vmem:[%s1665_s0 + $0x68] sm:$0xff]  ;;  %v69_v46 = vld [vmem:[%s1665_s0 + $0x1b0] sm:$0xff]  ;;  %v58_v49 = vld [vmem:[%s1665_s0 + $0x158] sm:$0xff] }
  0x13   :  { %864 = vmatmul.msk.f32.gmra.mxu0 %vm80_vm1, %v17_v5  ;;  %911 = vmatmul.msk.f32.gmra.mxu3 %vm80_vm1, %v64_v26  ;;  %v44_v44 = vld [vmem:[%s1665_s0 + $0xe8] sm:$0xff]  ;;  %v29_v47 = vld [vmem:[%s1665_s0 + $0x70] sm:$0xff]  ;;  %v70_v50 = vld [vmem:[%s1665_s0 + $0x1b8] sm:$0xff] }
  0x14   :  { %880 = vmatmul.msk.f32.gmra.mxu1 %vm80_vm1, %v33_v6  ;;  %v45_v48 = vld [vmem:[%s1665_s0 + $0xf0] sm:$0xff]  ;;  %v30_v51 = vld [vmem:[%s1665_s0 + $0x78] sm:$0xff]  ;;  %v59_v53 = vld [vmem:[%s1665_s0 + $0x160] sm:$0xff] }
  0x15   :  { %v46_v52 = vld [vmem:[%s1665_s0 + $0xf8] sm:$0xff]  ;;  %v71_v54 = vld [vmem:[%s1665_s0 + $0x1c0] sm:$0xff]  ;;  %v60_v57 = vld [vmem:[%s1665_s0 + $0x168] sm:$0xff] }
  0x16   :  { %v72_v58 = vld [vmem:[%s1665_s0 + $0x1c8] sm:$0xff]  ;;  %v61_v61 = vld [vmem:[%s1665_s0 + $0x170] sm:$0xff]  ;;  %v62_v1 = vld [vmem:[%s1665_s0 + $0x178] sm:$0xff] }
  0x17   :  { %896 = vmatmul.msk.f32.gmra.mxu2 %vm80_vm1, %v49_v15  ;;  %v73_v62 = vld [vmem:[%s1665_s0 + $0x1d0] sm:$0xff]  ;;  %v74_v2 = vld [vmem:[%s1665_s0 + $0x1d8] sm:$0xff]  ;;  %v75_v5 = vld [vmem:[%s1665_s0 + $0x1e0] sm:$0xff] }
  0x18   :  { %v76_v9 = vld [vmem:[%s1665_s0 + $0x1e8] sm:$0xff] }
  0x1b   :  { %865 = vmatmul.msk.f32.gmra.mxu0 %vm80_vm1, %v18_v7  ;;  %912 = vmatmul.msk.f32.gmra.mxu3 %vm80_vm1, %v65_v30 }
  0x1c   :  { %881 = vmatmul.msk.f32.gmra.mxu1 %vm80_vm1, %v34_v8 }
  0x1f   :  { %897 = vmatmul.msk.f32.gmra.mxu2 %vm80_vm1, %v50_v18 }
  0x23   :  { %866 = vmatmul.msk.f32.gmra.mxu0 %vm80_vm1, %v19_v10  ;;  %913 = vmatmul.msk.f32.gmra.mxu3 %vm80_vm1, %v66_v34 }
  0x24   :  { %882 = vmatmul.msk.f32.gmra.mxu1 %vm80_vm1, %v35_v11 }
  0x27   :  { %898 = vmatmul.msk.f32.gmra.mxu2 %vm80_vm1, %v51_v21 }
  0x2b   :  { %867 = vmatmul.msk.f32.gmra.mxu0 %vm80_vm1, %v20_v13  ;;  %914 = vmatmul.msk.f32.gmra.mxu3 %vm80_vm1, %v67_v38  ;;  %v77_v13 = vld [vmem:[%s1665_s0 + $0x1f0] sm:$0xff] }
  0x2c   :  { %883 = vmatmul.msk.f32.gmra.mxu1 %vm80_vm1, %v36_v14 }
  0x2f   :  { %899 = vmatmul.msk.f32.gmra.mxu2 %vm80_vm1, %v52_v25 }
  0x33   :  { %868 = vmatmul.msk.f32.gmra.mxu0 %vm80_vm1, %v21_v16  ;;  %915 = vmatmul.msk.f32.gmra.mxu3 %vm80_vm1, %v68_v42 }
  0x34   :  { %884 = vmatmul.msk.f32.gmra.mxu1 %vm80_vm1, %v37_v17  ;;  %v78_v17 = vld [vmem:[%s1665_s0 + $0x1f8] sm:$0xff] }
  0x37   :  { %900 = vmatmul.msk.f32.gmra.mxu2 %vm80_vm1, %v53_v29 }
  0x3b   :  { %869 = vmatmul.msk.f32.gmra.mxu0 %vm80_vm1, %v22_v19  ;;  %916 = vmatmul.msk.f32.gmra.mxu3 %vm80_vm1, %v69_v46 }
  0x3c   :  { %885 = vmatmul.msk.f32.gmra.mxu1 %vm80_vm1, %v38_v20 }
  0x3f   :  { %901 = vmatmul.msk.f32.gmra.mxu2 %vm80_vm1, %v54_v33 }
  0x43   :  { %870 = vmatmul.msk.f32.gmra.mxu0 %vm80_vm1, %v23_v23  ;;  %917 = vmatmul.msk.f32.gmra.mxu3 %vm80_vm1, %v70_v50 }
  0x44   :  { %886 = vmatmul.msk.f32.gmra.mxu1 %vm80_vm1, %v39_v24 }
  0x47   :  { %902 = vmatmul.msk.f32.gmra.mxu2 %vm80_vm1, %v55_v37 }
  0x4b   :  { %871 = vmatmul.msk.f32.gmra.mxu0 %vm80_vm1, %v24_v27  ;;  %918 = vmatmul.msk.f32.gmra.mxu3 %vm80_vm1, %v71_v54 }
  0x4c   :  { %887 = vmatmul.msk.f32.gmra.mxu1 %vm80_vm1, %v40_v28 }
  0x4f   :  { %903 = vmatmul.msk.f32.gmra.mxu2 %vm80_vm1, %v56_v41 }
  0x53   :  { %872 = vmatmul.msk.f32.gmra.mxu0 %vm80_vm1, %v25_v31  ;;  %919 = vmatmul.msk.f32.gmra.mxu3 %vm80_vm1, %v72_v58 }
  0x54   :  { %888 = vmatmul.msk.f32.gmra.mxu1 %vm80_vm1, %v41_v32 }
  0x57   :  { %904 = vmatmul.msk.f32.gmra.mxu2 %vm80_vm1, %v57_v45 }
  0x5b   :  { %873 = vmatmul.msk.f32.gmra.mxu0 %vm80_vm1, %v26_v35  ;;  %920 = vmatmul.msk.f32.gmra.mxu3 %vm80_vm1, %v73_v62 }
  0x5c   :  { %889 = vmatmul.msk.f32.gmra.mxu1 %vm80_vm1, %v42_v36 }
  0x5f   :  { %905 = vmatmul.msk.f32.gmra.mxu2 %vm80_vm1, %v58_v49 }
  0x63   :  { %874 = vmatmul.msk.f32.gmra.mxu0 %vm80_vm1, %v27_v39  ;;  %921 = vmatmul.msk.f32.gmra.mxu3 %vm80_vm1, %v74_v2 }
  0x64   :  { %890 = vmatmul.msk.f32.gmra.mxu1 %vm80_vm1, %v43_v40 }
  0x67   :  { %906 = vmatmul.msk.f32.gmra.mxu2 %vm80_vm1, %v59_v53 }
  0x6b   :  { %875 = vmatmul.msk.f32.gmra.mxu0 %vm80_vm1, %v28_v43  ;;  %922 = vmatmul.msk.f32.gmra.mxu3 %vm80_vm1, %v75_v5 }
  0x6c   :  { %891 = vmatmul.msk.f32.gmra.mxu1 %vm80_vm1, %v44_v44 }
  0x6f   :  { %907 = vmatmul.msk.f32.gmra.mxu2 %vm80_vm1, %v60_v57 }
  0x73   :  { %876 = vmatmul.msk.f32.gmra.mxu0 %vm80_vm1, %v29_v47  ;;  %923 = vmatmul.msk.f32.gmra.mxu3 %vm80_vm1, %v76_v9 }
  0x74   :  { %892 = vmatmul.msk.f32.gmra.mxu1 %vm80_vm1, %v45_v48 }
  0x77   :  { %908 = vmatmul.msk.f32.gmra.mxu2 %vm80_vm1, %v61_v61 }
  0x7b   :  { %877 = vmatmul.msk.f32.gmra.mxu0 %vm80_vm1, %v30_v51  ;;  %924 = vmatmul.msk.f32.gmra.mxu3 %vm80_vm1, %v77_v13 }
  0x7c   :  { %893 = vmatmul.msk.f32.gmra.mxu1 %vm80_vm1, %v46_v52 }
  0x7f   :  { %909 = vmatmul.msk.f32.gmra.mxu2 %vm80_vm1, %v62_v1 }
  0x80   :  { %v1232_v55 = vpop.f32.mrf.mxu0 }
  0x81   :  { %763 = vst [vmem:[#allocation2] sm:$0xff] %v1232_v55  ;;  %v1235_v56 = vpop.f32.mrf.mxu1 }
  0x82   :  { %779 = vst [vmem:[#allocation2 + $0x80] sm:$0xff] %v1235_v56 }
  0x83   :  { %925 = vmatmul.msk.f32.gmra.mxu3 %vm80_vm1, %v78_v17 }
  0x88   :  { %v1246_v59 = vpop.f32.mrf.mxu0 }
  0x89   :  { %764 = vst [vmem:[#allocation2 + $0x8] sm:$0xff] %v1246_v59  ;;  %v1249_v60 = vpop.f32.mrf.mxu1  ;;  %v486_v37 = vadd.f32 %v1246_v59, %v1232_v55 }
  0x8a   :  { %780 = vst [vmem:[#allocation2 + $0x88] sm:$0xff] %v1249_v60  ;;  %v1286_v7 = vpop.f32.mrf.mxu2 }
  0x8b   :  { %795 = vst [vmem:[#allocation2 + $0x100] sm:$0xff] %v1286_v7 }
  0x8e   :  { %v1339_v24 = vpop.f32.mrf.mxu3 }
  0x8f   :  { %811 = vst [vmem:[#allocation2 + $0x180] sm:$0xff] %v1339_v24 }
  0x90   :  { %v1260_v63 = vpop.f32.mrf.mxu0 }
  0x91   :  { %765 = vst [vmem:[#allocation2 + $0x10] sm:$0xff] %v1260_v63  ;;  %v1263_v0 = vpop.f32.mrf.mxu1  ;;  %v487_v38 = vadd.f32 %v486_v37, %v1260_v63 }
  0x92   :  { %781 = vst [vmem:[#allocation2 + $0x90] sm:$0xff] %v1263_v0  ;;  %v1299_v11 = vpop.f32.mrf.mxu2 }
  0x93   :  { %796 = vst [vmem:[#allocation2 + $0x108] sm:$0xff] %v1299_v11 }
  0x96   :  { %v1351_v28 = vpop.f32.mrf.mxu3 }
  0x97   :  { %812 = vst [vmem:[#allocation2 + $0x188] sm:$0xff] %v1351_v28 }
  0x98   :  { %v1274_v3 = vpop.f32.mrf.mxu0 }
  0x99   :  { %766 = vst [vmem:[#allocation2 + $0x18] sm:$0xff] %v1274_v3  ;;  %v1277_v4 = vpop.f32.mrf.mxu1  ;;  %v488_v41 = vadd.f32 %v487_v38, %v1274_v3 }
  0x9a   :  { %782 = vst [vmem:[#allocation2 + $0x98] sm:$0xff] %v1277_v4  ;;  %v1312_v15 = vpop.f32.mrf.mxu2 }
  0x9b   :  { %797 = vst [vmem:[#allocation2 + $0x110] sm:$0xff] %v1312_v15 }
  0x9e   :  { %v1363_v32 = vpop.f32.mrf.mxu3 }
  0x9f   :  { %813 = vst [vmem:[#allocation2 + $0x190] sm:$0xff] %v1363_v32 }
  0xa0   :  { %v1284_v6 = vpop.f32.mrf.mxu0 }
  0xa1   :  { %767 = vst [vmem:[#allocation2 + $0x20] sm:$0xff] %v1284_v6  ;;  %v1289_v8 = vpop.f32.mrf.mxu1  ;;  %v489_v44 = vadd.f32 %v488_v41, %v1284_v6 }
  0xa2   :  { %783 = vst [vmem:[#allocation2 + $0xa0] sm:$0xff] %v1289_v8  ;;  %v1325_v19 = vpop.f32.mrf.mxu2 }
  0xa3   :  { %1686 = vst [vmem:[#allocation8_spill] sm:$0xff] %v1325_v19 }
  0xa4   :  { %798 = vst [vmem:[#allocation2 + $0x118] sm:$0xff] %v1325_v19 }
  0xa6   :  { %v1375_v36 = vpop.f32.mrf.mxu3 }
  0xa7   :  { %814 = vst [vmem:[#allocation2 + $0x198] sm:$0xff] %v1375_v36 }
  0xa8   :  { %v1297_v10 = vpop.f32.mrf.mxu0 }
  0xa9   :  { %768 = vst [vmem:[#allocation2 + $0x28] sm:$0xff] %v1297_v10  ;;  %v1302_v12 = vpop.f32.mrf.mxu1  ;;  %v490_v45 = vadd.f32 %v489_v44, %v1297_v10 }
  0xaa   :  { %784 = vst [vmem:[#allocation2 + $0xa8] sm:$0xff] %v1302_v12  ;;  %v1334_v22 = vpop.f32.mrf.mxu2 }
  0xab   :  { %799 = vst [vmem:[#allocation2 + $0x120] sm:$0xff] %v1334_v22 }
  0xae   :  { %v1391_v43 = vpop.f32.mrf.mxu3 }
  0xaf   :  { %815 = vst [vmem:[#allocation2 + $0x1a0] sm:$0xff] %v1391_v43 }
  0xb0   :  { %v1310_v14 = vpop.f32.mrf.mxu0 }
  0xb1   :  { %769 = vst [vmem:[#allocation2 + $0x30] sm:$0xff] %v1310_v14  ;;  %v1315_v16 = vpop.f32.mrf.mxu1  ;;  %v491_v46 = vadd.f32 %v490_v45, %v1310_v14 }
  0xb2   :  { %785 = vst [vmem:[#allocation2 + $0xb0] sm:$0xff] %v1315_v16  ;;  %v1346_v26 = vpop.f32.mrf.mxu2 }
  0xb3   :  { %800 = vst [vmem:[#allocation2 + $0x128] sm:$0xff] %v1346_v26 }
  0xb6   :  { %v1407_v51 = vpop.f32.mrf.mxu3 }
  0xb7   :  { %1693 = vst [vmem:[#allocation15_spill] sm:$0xff] %v1407_v51 }
  0xb8   :  { %v1323_v18 = vpop.f32.mrf.mxu0  ;;  %816 = vst [vmem:[#allocation2 + $0x1a8] sm:$0xff] %v1407_v51 }
  0xb9   :  { %770 = vst [vmem:[#allocation2 + $0x38] sm:$0xff] %v1323_v18  ;;  %v1328_v20 = vpop.f32.mrf.mxu1  ;;  %v492_v49 = vadd.f32 %v491_v46, %v1323_v18 }
  0xba   :  { %1687 = vst [vmem:[#allocation9_spill] sm:$0xff] %v1328_v20  ;;  %v1358_v30 = vpop.f32.mrf.mxu2 }
  0xbb   :  { %786 = vst [vmem:[#allocation2 + $0xb8] sm:$0xff] %v1328_v20 }
  0xbc   :  { %801 = vst [vmem:[#allocation2 + $0x130] sm:$0xff] %v1358_v30 }
  0xbe   :  { %v1423_v1 = vpop.f32.mrf.mxu3 }
  0xbf   :  { %817 = vst [vmem:[#allocation2 + $0x1b0] sm:$0xff] %v1423_v1 }
  0xc0   :  { %v1332_v21 = vpop.f32.mrf.mxu0 }
  0xc1   :  { %771 = vst [vmem:[#allocation2 + $0x40] sm:$0xff] %v1332_v21  ;;  %v1337_v23 = vpop.f32.mrf.mxu1  ;;  %v493_v52 = vadd.f32 %v492_v49, %v1332_v21 }
  0xc2   :  { %1688 = vst [vmem:[#allocation10_spill] sm:$0xff] %v1337_v23  ;;  %v1370_v34 = vpop.f32.mrf.mxu2 }
  0xc3   :  { %787 = vst [vmem:[#allocation2 + $0xc0] sm:$0xff] %v1337_v23 }
  0xc4   :  { %1689 = vst [vmem:[#allocation11_spill] sm:$0xff] %v1370_v34 }
  0xc5   :  { %802 = vst [vmem:[#allocation2 + $0x138] sm:$0xff] %v1370_v34 }
  0xc6   :  { %v1439_v41 = vpop.f32.mrf.mxu3 }
  0xc7   :  { %1696 = vst [vmem:[#allocation18_spill] sm:$0xff] %v1439_v41 }
  0xc8   :  { %v1344_v25 = vpop.f32.mrf.mxu0  ;;  %818 = vst [vmem:[#allocation2 + $0x1b8] sm:$0xff] %v1439_v41 }
  0xc9   :  { %772 = vst [vmem:[#allocation2 + $0x48] sm:$0xff] %v1344_v25  ;;  %v1349_v27 = vpop.f32.mrf.mxu1  ;;  %v494_v53 = vadd.f32 %v493_v52, %v1344_v25 }
  0xca   :  { %788 = vst [vmem:[#allocation2 + $0xc8] sm:$0xff] %v1349_v27  ;;  %v1385_v40 = vpop.f32.mrf.mxu2 }
  0xcb   :  { %803 = vst [vmem:[#allocation2 + $0x140] sm:$0xff] %v1385_v40 }
  0xd0   :  { %v1356_v29 = vpop.f32.mrf.mxu0 }
  0xd1   :  { %773 = vst [vmem:[#allocation2 + $0x50] sm:$0xff] %v1356_v29  ;;  %v1361_v31 = vpop.f32.mrf.mxu1  ;;  %v495_v54 = vadd.f32 %v494_v53, %v1356_v29  ;;  %v1451_v53 = vpop.f32.mrf.mxu3 }
  0xd2   :  { %789 = vst [vmem:[#allocation2 + $0xd0] sm:$0xff] %v1361_v31  ;;  %v1401_v48 = vpop.f32.mrf.mxu2 }
  0xd3   :  { %804 = vst [vmem:[#allocation2 + $0x148] sm:$0xff] %v1401_v48 }
  0xd4   :  { %1697 = vst [vmem:[#allocation19_spill] sm:$0xff] %v1451_v53 }
  0xd5   :  { %819 = vst [vmem:[#allocation2 + $0x1c0] sm:$0xff] %v1451_v53 }
  0xd8   :  { %v1368_v33 = vpop.f32.mrf.mxu0 }
  0xd9   :  { %774 = vst [vmem:[#allocation2 + $0x58] sm:$0xff] %v1368_v33  ;;  %v1373_v35 = vpop.f32.mrf.mxu1  ;;  %v496_v61 = vadd.f32 %v495_v54, %v1368_v33 }
  0xda   :  { %1690 = vst [vmem:[#allocation12_spill] sm:$0xff] %v1373_v35  ;;  %v1417_v58 = vpop.f32.mrf.mxu2 }
  0xdb   :  { %790 = vst [vmem:[#allocation2 + $0xd8] sm:$0xff] %v1373_v35 }
  0xdc   :  { %805 = vst [vmem:[#allocation2 + $0x150] sm:$0xff] %v1417_v58 }
  0xe0   :  { %v1383_v39 = vpop.f32.mrf.mxu0 }
  0xe1   :  { %775 = vst [vmem:[#allocation2 + $0x60] sm:$0xff] %v1383_v39  ;;  %v1389_v42 = vpop.f32.mrf.mxu1  ;;  %v497_v2 = vadd.f32 %v496_v61, %v1383_v39 }
  0xe2   :  { %1691 = vst [vmem:[#allocation13_spill] sm:$0xff] %v1389_v42  ;;  %v1433_v17 = vpop.f32.mrf.mxu2 }
  0xe3   :  { %791 = vst [vmem:[#allocation2 + $0xe0] sm:$0xff] %v1389_v42 }
  0xe4   :  { %806 = vst [vmem:[#allocation2 + $0x158] sm:$0xff] %v1433_v17 }
  0xe8   :  { %v1399_v47 = vpop.f32.mrf.mxu0 }
  0xe9   :  { %776 = vst [vmem:[#allocation2 + $0x68] sm:$0xff] %v1399_v47  ;;  %v1405_v50 = vpop.f32.mrf.mxu1  ;;  %v498_v5 = vadd.f32 %v497_v2, %v1399_v47 }
  0xea   :  { %1692 = vst [vmem:[#allocation14_spill] sm:$0xff] %v1405_v50  ;;  %v1447_v49 = vpop.f32.mrf.mxu2 }
  0xeb   :  { %792 = vst [vmem:[#allocation2 + $0xe8] sm:$0xff] %v1405_v50 }
  0xec   :  { %807 = vst [vmem:[#allocation2 + $0x160] sm:$0xff] %v1447_v49 }
  0xf0   :  { %v1415_v57 = vpop.f32.mrf.mxu0 }
  0xf1   :  { %777 = vst [vmem:[#allocation2 + $0x70] sm:$0xff] %v1415_v57  ;;  %v1421_v62 = vpop.f32.mrf.mxu1  ;;  %v499_v9 = vadd.f32 %v498_v5, %v1415_v57 }
  0xf2   :  { %1694 = vst [vmem:[#allocation16_spill] sm:$0xff] %v1421_v62  ;;  %v1457_v5 = vpop.f32.mrf.mxu2 }
  0xf3   :  { %793 = vst [vmem:[#allocation2 + $0xf0] sm:$0xff] %v1421_v62 }
  0xf4   :  { %808 = vst [vmem:[#allocation2 + $0x168] sm:$0xff] %v1457_v5 }
  0xf8   :  { %v1431_v13 = vpop.f32.mrf.mxu0 }
  0xf9   :  { %v500_v37 = vadd.f32 %v499_v9, %v1431_v13  ;;  %778 = vst [vmem:[#allocation2 + $0x78] sm:$0xff] %v1431_v13  ;;  %v1437_v38 = vpop.f32.mrf.mxu1 }
  0xfa   :  { %1695 = vst [vmem:[#allocation17_spill] sm:$0xff] %v1437_v38 }
  0xfb   :  { %794 = vst [vmem:[#allocation2 + $0xf8] sm:$0xff] %v1437_v38  ;;  %v501_v44 = vadd.f32 %v500_v37, %v1235_v56  ;;  %v1461_v37 = vpop.f32.mrf.mxu3 }
  0xfc   :  { %1698 = vst [vmem:[#allocation20_spill] sm:$0xff] %v1461_v37 }
  0xfd   :  { %v502_v45 = vadd.f32 %v501_v44, %v1249_v60  ;;  %820 = vst [vmem:[#allocation2 + $0x1c8] sm:$0xff] %v1461_v37 }
  0xff   :  { %v503_v46 = vadd.f32 %v502_v45, %v1263_v0 }
 0x101   :  { %v504_v52 = vadd.f32 %v503_v46, %v1277_v4 }
 0x103   :  { %v505_v54 = vadd.f32 %v504_v52, %v1289_v8  ;;  %v1467_v52 = vpop.f32.mrf.mxu2 }
 0x104   :  { %1699 = vst [vmem:[#allocation21_spill] sm:$0xff] %v1467_v52 }
 0x105   :  { %v506_v61 = vadd.f32 %v505_v54, %v1302_v12  ;;  %809 = vst [vmem:[#allocation2 + $0x170] sm:$0xff] %v1467_v52 }
 0x107   :  { %v507_v2 = vadd.f32 %v506_v61, %v1315_v16  ;;  %v1471_v61 = vpop.f32.mrf.mxu3 }
 0x108   :  { %1700 = vst [vmem:[#allocation22_spill] sm:$0xff] %v1471_v61 }
 0x109   :  { %v508_v9 = vadd.f32 %v507_v2, %v1328_v20  ;;  %821 = vst [vmem:[#allocation2 + $0x1d0] sm:$0xff] %v1471_v61 }
 0x10b   :  { %v509_v44 = vadd.f32 %v508_v9, %v1337_v23  ;;  %v1477_v23 = vpop.f32.mrf.mxu2 }
 0x10c   :  { %1701 = vst [vmem:[#allocation23_spill] sm:$0xff] %v1477_v23 }
 0x10d   :  { %v510_v45 = vadd.f32 %v509_v44, %v1349_v27  ;;  %810 = vst [vmem:[#allocation2 + $0x178] sm:$0xff] %v1477_v23 }
 0x10f   :  { %v511_v46 = vadd.f32 %v510_v45, %v1361_v31  ;;  %v1481_v45 = vpop.f32.mrf.mxu3 }
 0x110   :  { %822 = vst [vmem:[#allocation2 + $0x1d8] sm:$0xff] %v1481_v45 }
 0x111   :  { %v512_v54 = vadd.f32 %v511_v46, %v1373_v35 }
 0x113   :  { %v513_v2 = vadd.f32 %v512_v54, %v1389_v42 }
 0x115   :  { %v514_v20 = vadd.f32 %v513_v2, %v1405_v50 }
 0x117   :  { %v515_v9 = vadd.f32 %v514_v20, %v1421_v62  ;;  %v1488_v50 = vpop.f32.mrf.mxu3 }
 0x118   :  { %1702 = vst [vmem:[#allocation24_spill] sm:$0xff] %v1488_v50 }
 0x119   :  { %v516_v44 = vadd.f32 %v515_v9, %v1437_v38  ;;  %823 = vst [vmem:[#allocation2 + $0x1e0] sm:$0xff] %v1488_v50 }
 0x11b   :  { %v517_v46 = vadd.f32 %v516_v44, %v1286_v7 }
 0x11d   :  { %v518_v35 = vadd.f32 %v517_v46, %v1299_v11 }
 0x11f   :  { %v519_v54 = vadd.f32 %v518_v35, %v1312_v15  ;;  %v1495_v42 = vpop.f32.mrf.mxu3 }
 0x120   :  { %824 = vst [vmem:[#allocation2 + $0x1e8] sm:$0xff] %v1495_v42 }
 0x121   :  { %v520_v2 = vadd.f32 %v519_v54, %v1325_v19 }
 0x123   :  { %v521_v20 = vadd.f32 %v520_v2, %v1334_v22 }
 0x125   :  { %v522_v9 = vadd.f32 %v521_v20, %v1346_v26 }
 0x127   :  { %v523_v38 = vadd.f32 %v522_v9, %v1358_v30  ;;  %v1502_v19 = vpop.f32.mrf.mxu3 }
 0x128   :  { %825 = vst [vmem:[#allocation2 + $0x1f0] sm:$0xff] %v1502_v19 }
 0x129   :  { %v524_v62 = vadd.f32 %v523_v38, %v1370_v34 }
 0x12b   :  { %v525_v35 = vadd.f32 %v524_v62, %v1385_v40 }
 0x12d   :  { %v526_v44 = vadd.f32 %v525_v35, %v1401_v48 }
 0x12f   :  { %v527_v46 = vadd.f32 %v526_v44, %v1417_v58  ;;  %v1509_v34 = vpop.f32.mrf.mxu3 }
 0x130   :  { %826 = vst [vmem:[#allocation2 + $0x1f8] sm:$0xff] %v1509_v34 }
 0x131   :  { %v528_v54 = vadd.f32 %v527_v46, %v1433_v17  ;;  %839 = dma.vmem_to_hbm [thread:$0]  %s832_s5, 8192, %s834_s30, [#allocation3], %s990_s6, %s990_s6, %s991_s7  }
 0x133   :  { %v529_v2 = vadd.f32 %v528_v54, %v1447_v49 }
 0x135   :  { %v530_v38 = vadd.f32 %v529_v2, %v1457_v5 }
 0x137   :  { %v531_v20 = vadd.f32 %v530_v38, %v1467_v52 }
 0x139   :  { %v532_v9 = vadd.f32 %v531_v20, %v1477_v23 }
 0x13b   :  { %v533_v62 = vadd.f32 %v532_v9, %v1339_v24 }
 0x13d   :  { %v534_v35 = vadd.f32 %v533_v62, %v1351_v28 }
 0x13f   :  { %v535_v44 = vadd.f32 %v534_v35, %v1363_v32 }
 0x141   :  { %v536_v46 = vadd.f32 %v535_v44, %v1375_v36 }
 0x143   :  { %v537_v54 = vadd.f32 %v536_v46, %v1391_v43 }
 0x145   :  { %v538_v2 = vadd.f32 %v537_v54, %v1407_v51  ;;  %v988_v51 = vmov 512.0  }
 0x146   :  { %934 = vrcp.f32 %v988_v51 }
 0x147   :  { %v539_v38 = vadd.f32 %v538_v2, %v1423_v1 }
 0x149   :  { %v540_v20 = vadd.f32 %v539_v38, %v1439_v41 }
 0x14b   :  { %v541_v23 = vadd.f32 %v540_v20, %v1451_v53 }
 0x14c   :  { %v935_v38 = vpop.eup %934 }
 0x14d   :  { %v542_v52 = vadd.f32 %v541_v23, %v1461_v37  ;;  %v556_v20 = vmul.f32 512.0, %v935_v38  ;;  %vm560_vm2 = vweird.f32 %v935_v38 }
 0x14f   :  { %v543_v9 = vadd.f32 %v542_v52, %v1471_v61  ;;  %v557_v23 = vsub.f32 1.0, %v556_v20 }
 0x151   :  { %v544_v62 = vadd.f32 %v543_v9, %v1481_v45  ;;  %v558_v52 = vmul.f32 %v935_v38, %v557_v23 }
 0x153   :  { %v545_v35 = vadd.f32 %v544_v62, %v1488_v50  ;;  %v559_v9 = vadd.f32 %v935_v38, %v558_v52 }
 0x155   :  { %v546_v44 = vadd.f32 %v545_v35, %v1495_v42  ;;  %v561_v50 = vsel %vm560_vm2, %v935_v38, %v559_v9 }
 0x157   :  { %v547_v46 = vadd.f32 %v546_v44, %v1502_v19 }
 0x159   :  { %v548_v54 = vadd.f32 %v547_v46, %v1509_v34 }
 0x15b   :  { %v549_v2 = vrot.slane %v548_v54, 4 }
 0x15d   :  { %v550_v41 = vadd.f32 %v549_v2, %v548_v54 }
 0x15f   :  { %v551_v53 = vrot.slane %v550_v41, 2 }
 0x161   :  { %v552_v37 = vadd.f32 %v551_v53, %v550_v41 }
 0x163   :  { %v553_v61 = vrot.slane %v552_v37, 1 }
 0x165   :  { %v554_v62 = vadd.f32 %v553_v61, %v552_v37 }
 0x167   :  { %v1528_v35 = vmul.f32 %v561_v50, %v554_v62 }
 0x169   :  { %v563_v44 = vsub.f32 %v1232_v55, %v1528_v35  ;;  %v564_v51 = vsub.f32 %v1246_v59, %v1528_v35  ;;  %v565_v46 = vsub.f32 %v1260_v63, %v1528_v35  ;;  %v566_v41 = vsub.f32 %v1274_v3, %v1528_v35 }
 0x16a   :  { %v567_v53 = vsub.f32 %v1284_v6, %v1528_v35  ;;  %v568_v61 = vsub.f32 %v1297_v10, %v1528_v35  ;;  %v569_v59 = vsub.f32 %v1310_v14, %v1528_v35  ;;  %v570_v3 = vsub.f32 %v1323_v18, %v1528_v35 }
 0x16b   :  { %v627_v54 = vmul.f32 %v563_v44, %v563_v44  ;;  %v628_v2 = vmul.f32 %v564_v51, %v564_v51  ;;  %v629_v37 = vmul.f32 %v565_v46, %v565_v46  ;;  %v630_v55 = vmul.f32 %v566_v41, %v566_v41 }
 0x16c   :  { %v631_v20 = vmul.f32 %v567_v53, %v567_v53  ;;  %v632_v6 = vmul.f32 %v568_v61, %v568_v61  ;;  %v571_v10 = vsub.f32 %v1332_v21, %v1528_v35  ;;  %v633_v52 = vmul.f32 %v569_v59, %v569_v59 }
 0x16d   :  { %v691_v50 = vadd.f32 %v628_v2, %v627_v54  ;;  %v572_v9 = vsub.f32 %v1344_v25, %v1528_v35  ;;  %v634_v62 = vmul.f32 %v570_v3, %v570_v3  ;;  %v573_v51 = vsub.f32 %v1356_v29, %v1528_v35 }
 0x16e   :  { %v635_v18 = vmul.f32 %v571_v10, %v571_v10  ;;  %v574_v54 = vsub.f32 %v1368_v33, %v1528_v35  ;;  %v575_v41 = vsub.f32 %v1383_v39, %v1528_v35  ;;  %v576_v25 = vsub.f32 %v1399_v47, %v1528_v35 }
 0x16f   :  { %v692_v38 = vadd.f32 %v691_v50, %v629_v37  ;;  %v636_v2 = vmul.f32 %v572_v9, %v572_v9  ;;  %v637_v53 = vmul.f32 %v573_v51, %v573_v51  ;;  %v577_v29 = vsub.f32 %v1415_v57, %v1528_v35 }
 0x170   :  { %v638_v50 = vmul.f32 %v574_v54, %v574_v54  ;;  %v578_v33 = vsub.f32 %v1431_v13, %v1528_v35  ;;  %v640_v59 = vmul.f32 %v576_v25, %v576_v25  ;;  %v579_v39 = vsub.f32 %v1235_v56, %v1528_v35 }
 0x171   :  { %v693_v63 = vadd.f32 %v692_v38, %v630_v55  ;;  %v639_v55 = vmul.f32 %v575_v41, %v575_v41  ;;  %v580_v47 = vsub.f32 %v1249_v60, %v1528_v35  ;;  %v581_v57 = vsub.f32 %v1263_v0, %v1528_v35 }
 0x172   :  { %v643_v10 = vmul.f32 %v579_v39, %v579_v39  ;;  %v582_v13 = vsub.f32 %v1277_v4, %v1528_v35  ;;  %v583_v56 = vsub.f32 %v1289_v8, %v1528_v35  ;;  %v584_v60 = vsub.f32 %v1302_v12, %v1528_v35  ;;  %v1706_v39 = vld [vmem:[#allocation13_spill] sm:$0xff] }
 0x173   :  { %v694_v23 = vadd.f32 %v693_v63, %v631_v20  ;;  %v641_v63 = vmul.f32 %v577_v29, %v577_v29  ;;  %v585_v0 = vsub.f32 %v1315_v16, %v1528_v35  ;;  %v588_v12 = vsub.f32 %v1349_v27, %v1528_v35 }
 0x174   :  { %v646_v51 = vmul.f32 %v582_v13, %v582_v13  ;;  %v589_v16 = vsub.f32 %v1361_v31, %v1528_v35 }
 0x175   :  { %v695_v14 = vadd.f32 %v694_v23, %v632_v6  ;;  %v642_v6 = vmul.f32 %v578_v33, %v578_v33 }
 0x177   :  { %v696_v44 = vadd.f32 %v695_v14, %v633_v52  ;;  %v644_v14 = vmul.f32 %v580_v47, %v580_v47 }
 0x179   :  { %v697_v46 = vadd.f32 %v696_v44, %v634_v62  ;;  %v645_v62 = vmul.f32 %v581_v57, %v581_v57 }
 0x17b   :  { %v698_v21 = vadd.f32 %v697_v46, %v635_v18  ;;  %v647_v46 = vmul.f32 %v583_v56, %v583_v56 }
 0x17d   :  { %v699_v37 = vadd.f32 %v698_v21, %v636_v2  ;;  %v1703_v2 = vld [vmem:[#allocation9_spill] sm:$0xff]  ;;  %v648_v21 = vmul.f32 %v584_v60, %v584_v60 }
 0x17e   :  { %v586_v4 = vsub.f32 %v1703_v2, %v1528_v35 }
 0x17f   :  { %v700_v61 = vadd.f32 %v699_v37, %v637_v53  ;;  %v1704_v53 = vld [vmem:[#allocation10_spill] sm:$0xff]  ;;  %v649_v37 = vmul.f32 %v585_v0, %v585_v0 }
 0x180   :  { %v587_v8 = vsub.f32 %v1704_v53, %v1528_v35 }
 0x181   :  { %v701_v38 = vadd.f32 %v700_v61, %v638_v50  ;;  %v650_v50 = vmul.f32 %v586_v4, %v586_v4 }
 0x182   :  { %v651_v29 = vmul.f32 %v587_v8, %v587_v8 }
 0x183   :  { %v702_v20 = vadd.f32 %v701_v38, %v639_v55  ;;  %v1705_v38 = vld [vmem:[#allocation12_spill] sm:$0xff] }
 0x184   :  { %v590_v33 = vsub.f32 %v1705_v38, %v1528_v35 }
 0x185   :  { %v703_v3 = vadd.f32 %v702_v20, %v640_v59  ;;  %v652_v59 = vmul.f32 %v588_v12, %v588_v12 }
 0x187   :  { %v704_v23 = vadd.f32 %v703_v3, %v641_v63  ;;  %v591_v63 = vsub.f32 %v1706_v39, %v1528_v35  ;;  %v653_v3 = vmul.f32 %v589_v16, %v589_v16 }
 0x189   :  { %v705_v52 = vadd.f32 %v704_v23, %v642_v6  ;;  %v1707_v6 = vld [vmem:[#allocation14_spill] sm:$0xff]  ;;  %v654_v23 = vmul.f32 %v590_v33, %v590_v33 }
 0x18a   :  { %v592_v27 = vsub.f32 %v1707_v6, %v1528_v35  ;;  %v606_v6 = vsub.f32 %v1433_v17, %v1528_v35 }
 0x18b   :  { %v706_v9 = vadd.f32 %v705_v52, %v643_v10  ;;  %v1708_v10 = vld [vmem:[#allocation16_spill] sm:$0xff]  ;;  %v655_v52 = vmul.f32 %v591_v63, %v591_v63 }
 0x18c   :  { %v593_v31 = vsub.f32 %v1708_v10, %v1528_v35  ;;  %v656_v56 = vmul.f32 %v592_v27, %v592_v27 }
 0x18d   :  { %v707_v44 = vadd.f32 %v706_v9, %v644_v14  ;;  %v1709_v14 = vld [vmem:[#allocation17_spill] sm:$0xff] }
 0x18e   :  { %v594_v9 = vsub.f32 %v1709_v14, %v1528_v35  ;;  %v657_v60 = vmul.f32 %v593_v31, %v593_v31  ;;  %v670_v31 = vmul.f32 %v606_v6, %v606_v6 }
 0x18f   :  { %v708_v18 = vadd.f32 %v707_v44, %v645_v62  ;;  %v595_v44 = vsub.f32 %v1286_v7, %v1528_v35  ;;  %v599_v7 = vsub.f32 %v1334_v22, %v1528_v35  ;;  %v603_v22 = vsub.f32 %v1385_v40, %v1528_v35 }
 0x190   :  { %v658_v0 = vmul.f32 %v594_v9, %v594_v9  ;;  %v607_v40 = vsub.f32 %v1447_v49, %v1528_v35  ;;  %v611_v49 = vsub.f32 %v1339_v24, %v1528_v35  ;;  %v615_v24 = vsub.f32 %v1391_v43, %v1528_v35 }
 0x191   :  { %v709_v54 = vadd.f32 %v708_v18, %v646_v51  ;;  %v596_v18 = vsub.f32 %v1299_v11, %v1528_v35  ;;  %v659_v2 = vmul.f32 %v595_v44, %v595_v44  ;;  %v600_v11 = vsub.f32 %v1346_v26, %v1528_v35 }
 0x192   :  { %v604_v26 = vsub.f32 %v1401_v48, %v1528_v35  ;;  %v608_v48 = vsub.f32 %v1457_v5, %v1528_v35  ;;  %v671_v14 = vmul.f32 %v607_v40, %v607_v40  ;;  %v612_v5 = vsub.f32 %v1351_v28, %v1528_v35 }
 0x193   :  { %v710_v41 = vadd.f32 %v709_v54, %v647_v46  ;;  %v597_v54 = vsub.f32 %v1312_v15, %v1528_v35  ;;  %v660_v53 = vmul.f32 %v596_v18, %v596_v18  ;;  %v601_v15 = vsub.f32 %v1358_v30, %v1528_v35 }
 0x194   :  { %v664_v38 = vmul.f32 %v600_v11, %v600_v11  ;;  %v605_v30 = vsub.f32 %v1417_v58, %v1528_v35  ;;  %v668_v27 = vmul.f32 %v604_v26, %v604_v26  ;;  %v679_v11 = vmul.f32 %v615_v24, %v615_v24 }
 0x195   :  { %v711_v25 = vadd.f32 %v710_v41, %v648_v21  ;;  %v1710_v21 = vld [vmem:[#allocation8_spill] sm:$0xff]  ;;  %v624_v40 = vsub.f32 %v1495_v42, %v1528_v35 }
 0x196   :  { %v598_v41 = vsub.f32 %v1710_v21, %v1528_v35  ;;  %v676_v21 = vmul.f32 %v612_v5, %v612_v5 }
 0x197   :  { %v712_v61 = vadd.f32 %v711_v25, %v649_v37  ;;  %v661_v37 = vmul.f32 %v597_v54, %v597_v54  ;;  %v675_v54 = vmul.f32 %v611_v49, %v611_v49 }
 0x198   :  { %v662_v12 = vmul.f32 %v598_v41, %v598_v41 }
 0x199   :  { %v713_v55 = vadd.f32 %v712_v61, %v650_v50  ;;  %v663_v61 = vmul.f32 %v599_v7, %v599_v7  ;;  %v1714_v7 = vld [vmem:[#allocation15_spill] sm:$0xff] }
 0x19a   :  { %v616_v28 = vsub.f32 %v1714_v7, %v1528_v35 }
 0x19b   :  { %v714_v20 = vadd.f32 %v713_v55, %v651_v29  ;;  %v1711_v29 = vld [vmem:[#allocation11_spill] sm:$0xff] }
 0x19c   :  { %v602_v55 = vsub.f32 %v1711_v29, %v1528_v35 }
 0x19d   :  { %v715_v47 = vadd.f32 %v714_v20, %v652_v59  ;;  %v665_v59 = vmul.f32 %v601_v15, %v601_v15  ;;  %v680_v15 = vmul.f32 %v616_v28, %v616_v28 }
 0x19e   :  { %v666_v39 = vmul.f32 %v602_v55, %v602_v55 }
 0x19f   :  { %v716_v57 = vadd.f32 %v715_v47, %v653_v3  ;;  %v667_v3 = vmul.f32 %v603_v22, %v603_v22 }
 0x1a1   :  { %v717_v13 = vadd.f32 %v716_v57, %v654_v23  ;;  %v669_v57 = vmul.f32 %v605_v30, %v605_v30 }
 0x1a3   :  { %v718_v62 = vadd.f32 %v717_v13, %v655_v52  ;;  %v1712_v13 = vld [vmem:[#allocation21_spill] sm:$0xff] }
 0x1a4   :  { %v609_v58 = vsub.f32 %v1712_v13, %v1528_v35  ;;  %v688_v13 = vmul.f32 %v624_v40, %v624_v40 }
 0x1a5   :  { %v719_v51 = vadd.f32 %v718_v62, %v656_v56  ;;  %v1713_v56 = vld [vmem:[#allocation23_spill] sm:$0xff]  ;;  %v672_v62 = vmul.f32 %v608_v48, %v608_v48  ;;  %v625_v48 = vsub.f32 %v1502_v19, %v1528_v35 }
 0x1a6   :  { %v610_v17 = vsub.f32 %v1713_v56, %v1528_v35 }
 0x1a7   :  { %v720_v46 = vadd.f32 %v719_v51, %v657_v60  ;;  %v673_v60 = vmul.f32 %v609_v58, %v609_v58 }
 0x1a8   :  { %v674_v18 = vmul.f32 %v610_v17, %v610_v17 }
 0x1a9   :  { %v721_v4 = vadd.f32 %v720_v46, %v658_v0  ;;  %v613_v46 = vsub.f32 %v1363_v32, %v1528_v35  ;;  %v617_v32 = vsub.f32 %v1423_v1, %v1528_v35 }
 0x1ab   :  { %v722_v8 = vadd.f32 %v721_v4, %v659_v2  ;;  %v614_v4 = vsub.f32 %v1375_v36, %v1528_v35  ;;  %v681_v29 = vmul.f32 %v617_v32, %v617_v32 }
 0x1ad   :  { %v723_v25 = vadd.f32 %v722_v8, %v660_v53  ;;  %v677_v53 = vmul.f32 %v613_v46, %v613_v46 }
 0x1af   :  { %v724_v50 = vadd.f32 %v723_v25, %v661_v37  ;;  %v678_v37 = vmul.f32 %v614_v4, %v614_v4 }
 0x1b1   :  { %v725_v16 = vadd.f32 %v724_v50, %v662_v12  ;;  %v1715_v50 = vld [vmem:[#allocation18_spill] sm:$0xff] }
 0x1b2   :  { %v618_v36 = vsub.f32 %v1715_v50, %v1528_v35 }
 0x1b3   :  { %v726_v33 = vadd.f32 %v725_v16, %v663_v61  ;;  %v1716_v16 = vld [vmem:[#allocation19_spill] sm:$0xff] }
 0x1b4   :  { %v619_v43 = vsub.f32 %v1716_v16, %v1528_v35  ;;  %v682_v22 = vmul.f32 %v618_v36, %v618_v36 }
 0x1b5   :  { %v727_v20 = vadd.f32 %v726_v33, %v664_v38  ;;  %v1717_v38 = vld [vmem:[#allocation20_spill] sm:$0xff] }
 0x1b6   :  { %v620_v33 = vsub.f32 %v1717_v38, %v1528_v35  ;;  %v683_v26 = vmul.f32 %v619_v43, %v619_v43 }
 0x1b7   :  { %v728_v63 = vadd.f32 %v727_v20, %v665_v59  ;;  %v1718_v20 = vld [vmem:[#allocation22_spill] sm:$0xff] }
 0x1b8   :  { %v621_v1 = vsub.f32 %v1718_v20, %v1528_v35  ;;  %v684_v30 = vmul.f32 %v620_v33, %v620_v33 }
 0x1b9   :  { %v729_v47 = vadd.f32 %v728_v63, %v666_v39  ;;  %v622_v63 = vsub.f32 %v1481_v45, %v1528_v35  ;;  %v626_v45 = vsub.f32 %v1509_v34, %v1528_v35 }
 0x1bb   :  { %v730_v23 = vadd.f32 %v729_v47, %v667_v3  ;;  %v1719_v47 = vld [vmem:[#allocation24_spill] sm:$0xff]  ;;  %v690_v56 = vmul.f32 %v626_v45, %v626_v45 }
 0x1bc   :  { %v623_v6 = vsub.f32 %v1719_v47, %v1528_v35 }
 0x1bd   :  { %v731_v10 = vadd.f32 %v730_v23, %v668_v27  ;;  %v685_v27 = vmul.f32 %v621_v1, %v621_v1 }
 0x1bf   :  { %v732_v52 = vadd.f32 %v731_v10, %v669_v57  ;;  %v686_v57 = vmul.f32 %v622_v63, %v622_v63 }
 0x1c1   :  { %v733_v9 = vadd.f32 %v732_v52, %v670_v31  ;;  %v687_v31 = vmul.f32 %v623_v6, %v623_v6 }
 0x1c3   :  { %v734_v44 = vadd.f32 %v733_v9, %v671_v14  ;;  %v689_v14 = vmul.f32 %v625_v48, %v625_v48 }
 0x1c5   :  { %v735_v51 = vadd.f32 %v734_v44, %v672_v62 }
 0x1c7   :  { %v736_v0 = vadd.f32 %v735_v51, %v673_v60 }
 0x1c9   :  { %v737_v2 = vadd.f32 %v736_v0, %v674_v18 }
 0x1cb   :  { %v738_v41 = vadd.f32 %v737_v2, %v675_v54 }
 0x1cd   :  { %v739_v8 = vadd.f32 %v738_v41, %v676_v21 }
 0x1cf   :  { %v740_v25 = vadd.f32 %v739_v8, %v677_v53 }
 0x1d1   :  { %v741_v12 = vadd.f32 %v740_v25, %v678_v37 }
 0x1d3   :  { %v742_v61 = vadd.f32 %v741_v12, %v679_v11 }
 0x1d5   :  { %v743_v55 = vadd.f32 %v742_v61, %v680_v15 }
 0x1d7   :  { %v744_v59 = vadd.f32 %v743_v55, %v681_v29 }
 0x1d9   :  { %v745_v39 = vadd.f32 %v744_v59, %v682_v22 }
 0x1db   :  { %v746_v3 = vadd.f32 %v745_v39, %v683_v26 }
 0x1dd   :  { %v747_v23 = vadd.f32 %v746_v3, %v684_v30 }
 0x1df   :  { %v748_v10 = vadd.f32 %v747_v23, %v685_v27 }
 0x1e1   :  { %v749_v52 = vadd.f32 %v748_v10, %v686_v57 }
 0x1e3   :  { %v750_v58 = vadd.f32 %v749_v52, %v687_v31 }
 0x1e5   :  { %v751_v9 = vadd.f32 %v750_v58, %v688_v13 }
 0x1e7   :  { %v752_v17 = vadd.f32 %v751_v9, %v689_v14 }
 0x1e9   :  { %v753_v62 = vadd.f32 %v752_v17, %v690_v56 }
 0x1eb   :  { %v754_v44 = vrot.slane %v753_v62, 4 }
 0x1ed   :  { %v755_v49 = vadd.f32 %v754_v44, %v753_v62 }
 0x1ef   :  { %v756_v42 = vrot.slane %v755_v49, 2 }
 0x1f1   :  { %v757_v60 = vadd.f32 %v756_v42, %v755_v49 }
 0x1f3   :  { %v758_v51 = vrot.slane %v757_v60, 1 }
 0x1f5   :  { %v759_v19 = vadd.f32 %v758_v51, %v757_v60 }
 0x1f7   :  { %v761_v34 = vsel %vm760_vm3, %v1528_v35, %v759_v19 }
 0x1f8   :  { %762 = vst [vmem:[#allocation4] sm:$0x3] %v761_v34 }
 0x1f9   :  { %850 = dma.vmem_to_hbm [thread:$0]  %s846_s8, 32, %s848_s11, [#allocation5]  }
 0x1fa   :  { %984 = dma.done.wait [#allocation3], 8192  }
 0x1fb   :  { %985 = vsyncadd [#allocation3], 4294959104 }
 0x1fc   :  { %986 = dma.done.wait [#allocation5], 32  }
 0x1fd   :  { %987 = vsyncadd [#allocation5], 4294967264 }
 0x1fe   :  { %859 = vsyncpa [#allocation3], 1 }
 0x1ff   :  { %860 = vsyncpa [#allocation5], 1 }

</bundles_post_ra>
